<compile_context>
chip_gen: v7x
topology: tpu7x:2x2x1
jax: 0.10.0
libtpu: 0.0.40
codegen_flags: <defaults>
</compile_context>

<pallas_src>
import jax
import jax.numpy as jnp
from jax.experimental import pallas as pl
from jax.experimental.pallas import tpu as pltpu

EPS = 1e-5
LANE = 128
MAX_TM = 512      # max rows per M tile (amortizes ~0.35us per-grid-step overhead)
MAX_TN = 2048     # max output channels per N tile (keeps resident W small on v7x)


def _round_up(x, m):
    return ((x + m - 1) // m) * m


def ann_block_kernel(x_ref, w_ref, b_ref, o_ref):
    # synapse (+ folded BN / AnnSampler scale) on the MXU, f32 accumulation.
    # x arrives f32 straight from HBM (no wrapper pad/cast pass) and is cast to
    # the matmul dtype here; the bias + relu epilogue stays in f32.
    x = x_ref[...].astype(w_ref.dtype)
    z = jnp.dot(x, w_ref[...], preferred_element_type=jnp.float32)
    # folded BN shift, then AnnSampler relu; neuron.drop is identity in eval mode.
    # TODO(synk): training-mode dropout (stateful RNG) and SNN/SAMPLE spiking
    #             dynamics / delay-shift are not representable as a stateless
    #             feed-forward kernel.
    o_ref[...] = jnp.maximum(z + b_ref[...], 0.0).astype(o_ref.dtype)


def fold_block_params(weight, gamma, beta, mean, var, scale, *,
                      eps=EPS, matmul_dtype=jnp.bfloat16):
    """One-time (init-time) parameter preparation.

    Folds inference batch-norm and the AnnSampler scale into the synapse weight
    and a bias:
        relu(scale * ((x @ W.T - mean) * rsqrt(var+eps) * gamma + beta))
      = relu(x @ W' + b')
    with  W'[:, c] = W.T[:, c] * (gamma[c] * rsqrt(var[c]+eps) * scale)
          b'[c]    = scale * (beta[c] - mean[c] * gamma[c] * rsqrt(var[c]+eps))

    Returns (wT_folded, bias_folded): weight pre-transposed to (C_in, N_pad)
    with only N zero-padded to a multiple of 128, cast to `matmul_dtype`
    (bf16 is an intentional inference-precision trade-off); bias stays f32.
    Assumes a scalar AnnSampler scale (per-channel scale would need a (C_out,)
    fold instead).
    """
    c_out, c_in = weight.shape
    inv = jax.lax.rsqrt(var.reshape(-1) + eps)                       # (C_out,)
    ch_scale = gamma.reshape(-1) * inv * scale.reshape(())           # (C_out,)
    wT = weight.T * ch_scale[None, :]                                # (C_in, C_out) f32
    bias = scale.reshape(()) * (beta.reshape(-1)
                                - mean.reshape(-1) * gamma.reshape(-1) * inv)

    n_pad = _round_up(c_out, LANE)
    wT = jnp.pad(wT, ((0, 0), (0, n_pad - c_out)))
    bias = jnp.pad(bias, (0, n_pad - c_out)).reshape(1, n_pad).astype(jnp.float32)
    return wT.astype(matmul_dtype), bias


def abstract_block_forward(x, wT_folded, bias_folded, c_out, *,
                           max_tm=MAX_TM, max_tn=MAX_TN, out_dtype=jnp.float32):
    """x: (M, C_in) f32 (unpadded).  wT_folded: (C_in, N_pad) pre-folded /
    pre-transposed bf16 weight.  bias_folded: (1, N_pad) f32.
    Returns (M, c_out) in out_dtype (set bf16 if the next block consumes bf16)."""
    m, c_in = x.shape
    k, n_pad = wT_folded.shape
    assert k == c_in and bias_folded.shape == (1, n_pad) and c_out <= n_pad

    # M tiling: balanced tiles, no wrapper-side padding of x (a ragged last
    # tile is masked by Pallas); 8-row aligned for dense f32 sublanes.
    if m <= max_tm:
        tm, gm = m, 1
    else:
        tm = _round_up(pl.cdiv(m, pl.cdiv(m, max_tm)), 8)
        gm = pl.cdiv(m, tm)

    # N tiling: single resident weight block when small enough, otherwise
    # stream 128-multiple N tiles (needed for v7x's 64 MiB VMEM at big C_out).
    tn = n_pad if n_pad <= max_tn else max_tn
    gn = pl.cdiv(n_pad, tn)

    # Weight / bias never change across the grid when gn == 1 -> single-buffer
    # them to halve the resident VMEM footprint of the dominant operand.
    const_kwargs = dict(pipeline_mode=pl.Buffered(1)) if gn == 1 else {}

    out_itemsize = jnp.dtype(out_dtype).itemsize
    w_bufs = 1 if gn == 1 else 2
    vmem_est = (2 * tm * c_in * x.dtype.itemsize            # x double-buffered (f32)
                + w_bufs * c_in * tn * wT_folded.dtype.itemsize
                + w_bufs * tn * 4                            # bias
                + 2 * tm * tn * out_itemsize)                # out double-buffered
    vmem_limit = int(min(64 << 20, max(32 << 20, vmem_est * 3 // 2)))

    cost = pl.CostEstimate(
        flops=2 * m * c_in * n_pad,
        transcendentals=0,
        bytes_accessed=(m * c_in * x.dtype.itemsize
                        + c_in * n_pad * wT_folded.dtype.itemsize
                        + n_pad * 4
                        + m * n_pad * out_itemsize))

    out = pl.pallas_call(
        ann_block_kernel,
        out_shape=jax.ShapeDtypeStruct((m, n_pad), out_dtype),
        grid_spec=pltpu.PrefetchScalarGridSpec(
            num_scalar_prefetch=0,
            grid=(gm, gn),
            in_specs=[
                pl.BlockSpec((tm, c_in), lambda i, j: (i, 0)),      # x (f32, unpadded K)
                pl.BlockSpec((c_in, tn), lambda i, j: (0, j), **const_kwargs),  # folded W^T
                pl.BlockSpec((1, tn), lambda i, j: (0, j), **const_kwargs),     # folded bias
            ],
            out_specs=pl.BlockSpec((tm, tn), lambda i, j: (i, j)),  # lane-dense (tn%128==0)
        ),
        # Independent output tiles -> both axes 'parallel' (lets v7x shard across
        # its 2 TensorCores).
        compiler_params=pltpu.CompilerParams(
            dimension_semantics=("parallel", "parallel"),
            vmem_limit_bytes=vmem_limit),
        cost_estimate=cost,
    )(x, wT_folded, bias_folded)

    if n_pad != c_out:
        # TODO(synk): let the consumer fuse this trim away (or keep the padded
        #             (M, N_pad) buffer) to avoid an extra HBM copy.
        out = out[:, :c_out]
    return out


def reference_forward(x, weight, gamma, beta, mean, var, scale):
    """Original (unfused, full-f32) module math."""
    z = x @ weight.T
    z = (z - mean) * jax.lax.rsqrt(var + EPS) * gamma + beta
    return jnp.maximum(z * scale.reshape(()), 0.0)


if __name__ == "__main__":
    B, T, C_in, C_out = 2, 8, 32, 64     # small shapes consistent with a Dense block
    key = jax.random.PRNGKey(0)
    kx, kw, kg, kb, km, kv = jax.random.split(key, 6)

    x_btc = jax.random.normal(kx, (B, T, C_in), dtype=jnp.float32)
    x = x_btc.reshape(B * T, C_in)                                   # (M, C_in)

    # deterministic synthetic parameters (shapes implied by Dense synapse + BN neuron)
    weight = 0.2 * jax.random.normal(kw, (C_out, C_in), dtype=jnp.float32)
    gamma = 1.0 + 0.1 * jax.random.normal(kg, (1, C_out), dtype=jnp.float32)
    beta = 0.1 * jax.random.normal(kb, (1, C_out), dtype=jnp.float32)
    mean = 0.05 * jax.random.normal(km, (1, C_out), dtype=jnp.float32)
    var = 1.0 + 0.1 * jnp.abs(jax.random.normal(kv, (1, C_out), dtype=jnp.float32))
    scale = jnp.array([1.25], dtype=jnp.float32)                     # AnnSampler scale

    # One-time parameter prep: fold BN + scale, transpose, pad N to 128, cast to bf16.
    wT_f, b_f = fold_block_params(weight, gamma, beta, mean, var, scale)

    out = abstract_block_forward(x, wT_f, b_f, C_out)
    out = jax.block_until_ready(out)
    assert out.shape == (B * T, C_out)

    # (a) tight check vs. the exact kernel semantics (folded params, bf16 matmul,
    #     f32 accumulation + f32 epilogue)
    z_ref = jnp.dot(x.astype(jnp.bfloat16), wT_f[:, :C_out],
                    preferred_element_type=jnp.float32)
    ref_folded = jnp.maximum(z_ref + b_f[:, :C_out], 0.0)
    assert jnp.allclose(out, ref_folded, atol=1e-3, rtol=1e-3), \
        "mismatch vs folded bf16 reference"

    # (b) fidelity to the original full-f32 module math (tolerance covers bf16 matmul)
    ref_full = reference_forward(x, weight, gamma, beta, mean, var, scale)
    assert jnp.allclose(out, ref_full, atol=5e-2, rtol=5e-2), \
        "mismatch vs original f32 reference"

    print("KERNEL_OK")
</pallas_src>

<mosaic_0001>
module attributes {stable_mosaic.version = 11 : i64} {
  func.func @ann_block_kernel(%arg0: i32, %arg1: i32, %arg2: memref<16x32xf32, #tpu.memory_space<vmem>>, %arg3: memref<32x128xbf16, #tpu.memory_space<vmem>>, %arg4: memref<1x128xf32, #tpu.memory_space<vmem>>, %arg5: memref<16x128xf32, #tpu.memory_space<vmem>>) attributes {dimension_semantics = [#tpu.dimension_semantics<parallel>, #tpu.dimension_semantics<parallel>], iteration_bounds = array<i64: 1, 1>, scalar_prefetch = 0 : i64, scratch_operands = 0 : i64, tpu.core_type = #tpu.core_type<tc>, window_params = [{transform_indices = @transform_0, window_bounds = array<i64: 16, 32>}, {pipeline_mode = #tpu.pipeline_mode<synchronous>, transform_indices = @transform_1, window_bounds = array<i64: 32, 128>}, {pipeline_mode = #tpu.pipeline_mode<synchronous>, transform_indices = @transform_2, window_bounds = array<i64: 1, 128>}, {transform_indices = @transform_3, window_bounds = array<i64: 16, 128>}]} {
    %c0 = arith.constant 0 : index
    %c0_0 = arith.constant 0 : index
    %0 = vector.load %arg2[%c0, %c0_0] : memref<16x32xf32, #tpu.memory_space<vmem>>, vector<16x32xf32>
    %1 = arith.truncf %0 : vector<16x32xf32> to vector<16x32xbf16>
    %c0_1 = arith.constant 0 : index
    %c0_2 = arith.constant 0 : index
    %2 = vector.load %arg3[%c0_1, %c0_2] : memref<32x128xbf16, #tpu.memory_space<vmem>>, vector<32x128xbf16>
    %cst = arith.constant dense<0.000000e+00> : vector<16x128xf32>
    %3 = tpu.matmul %1, %2, %cst {dimension_numbers = #tpu.dot_dimension_numbers<[1], [0], [0], [1], [0, 0, 1, 1], [], []>} : vector<16x32xbf16>, vector<32x128xbf16>, vector<16x128xf32> -> vector<16x128xf32>
    %c0_3 = arith.constant 0 : index
    %c0_4 = arith.constant 0 : index
    %4 = vector.load %arg4[%c0_3, %c0_4] : memref<1x128xf32, #tpu.memory_space<vmem>>, vector<1x128xf32>
    %5 = vector.broadcast %4 : vector<1x128xf32> to vector<16x128xf32>
    %6 = arith.addf %3, %5 : vector<16x128xf32>
    %cst_5 = arith.constant 0.000000e+00 : f32
    %7 = vector.broadcast %cst_5 : f32 to vector<16x128xf32>
    %8 = arith.maximumf %6, %7 : vector<16x128xf32>
    %c0_6 = arith.constant 0 : index
    %c0_7 = arith.constant 0 : index
    %9 = vector.load %arg5[%c0_6, %c0_7] : memref<16x128xf32, #tpu.memory_space<vmem>>, vector<16x128xf32>
    tpu.vector_store %arg5[%c0_6, %c0_7], %8 {strides = array<i32>} : memref<16x128xf32, #tpu.memory_space<vmem>>, vector<16x128xf32>,
    return
  }
  func.func @transform_0(%arg0: i32, %arg1: i32) -> (i32, i32) {
    %c0_i32 = arith.constant 0 : i32
    %c0_i32_0 = arith.constant 0 : i32
    return %arg0, %c0_i32 : i32, i32
  }
  func.func @transform_1(%arg0: i32, %arg1: i32) -> (i32, i32) {
    %c0_i32 = arith.constant 0 : i32
    %c0_i32_0 = arith.constant 0 : i32
    return %c0_i32, %arg1 : i32, i32
  }
  func.func @transform_2(%arg0: i32, %arg1: i32) -> (i32, i32) {
    %c0_i32 = arith.constant 0 : i32
    %c0_i32_0 = arith.constant 0 : i32
    return %c0_i32, %arg1 : i32, i32
  }
  func.func @transform_3(%arg0: i32, %arg1: i32) -> (i32, i32) {
    %c0_i32 = arith.constant 0 : i32
    return %arg0, %arg1 : i32, i32
  }
}

</mosaic_0001>

<bundles_post_ra>
// kernel: tpu_custom_call.1
= control target key start
LH: loop header
LB: loop body
LE: loop exit
PB: predicated region body
PF: predicated region fallthrough
CT: control target
= control target key end

     0   :  { %8 = vsyncpa [#allocation3], 0  ;;  %s309_s0 = inlined_call_operand.hbm [shape: f32[16,32], index: 0, kind: input, shape index: {}]   ;;  %s310_s1 = inlined_call_operand.hbm [shape: bf16[32,128], index: 1, kind: input, shape index: {}]   ;;  %s311_s2 = inlined_call_operand.vmem [shape: f32[1,128], index: 2, kind: input, shape index: {}]   ;;  %s312_s3 = inlined_call_operand.hbm [shape: f32[16,128], index: 3, kind: output, shape index: {}]  }
   0x1   :  { %9 = vsyncpa [#allocation6], 0 }
   0x2   :  { %10 = vsyncpa [#allocation4], 0  ;;  %s235_s12 = smov [#allocation2]   ;;  %s163_s16 = scalar_lea.hbm %s309_s0, 256 }
   0x3   :  { %s16_s13 = sshll.u32 %s235_s12, 4  ;;  %p164_p0 = scmp.ne.s32.totalorder %s309_s0, %s163_s16  ;;  %s17_s13 = int_to_ptr.vmem [resolvable:$true] %s16_s13 }
   0x4   :  { %p167_p1 = scmp.lt.u32.totalorder %s163_s16, %s309_s0 }
   0x6   :  { %p169_p2 = pnand %p167_p1, %p164_p0 }
   0x8   :  { %172 = shalt.err (!%p169_p2)
}
   0x9   :  { %s173_s21 = scalar_lea.vmem %s17_s13, 256  ;;  %p178_p4 = scmp.lt.s32.totalorder %s17_s13, %s17_s13 }
   0xa   :  { %p174_p3 = scmp.ne.s32.totalorder %s17_s13, %s173_s21  ;;  %p179_p5 = scmp.lt.s32.totalorder %s173_s21, %s173_s21 }
   0xc   :  { %p180_p6 = por %p179_p5, %p178_p4 }
   0xe   :  { %p181_p7 = pnand %p180_p6, %p174_p3 }
  0x10   :  { %184 = shalt.err (!%p181_p7)
}
  0x11   :  { %s236_s22 = smov 128   ;;  %s237_s23 = smov 8  }
  0x12   :  { %22 = dma.hbm_to_vmem [thread:$0]  %s309_s0, 256, %s17_s13, [#allocation3], %s236_s22, %s236_s22, %s237_s23  }
  0x13   :  { %s238_s26 = smov [#allocation5]   ;;  %s185_s30 = scalar_lea.hbm %s310_s1, 256 }
  0x14   :  { %s28_s27 = sshll.u32 %s238_s26, 4  ;;  %p186_p8 = scmp.ne.s32.totalorder %s310_s1, %s185_s30  ;;  %s29_s27 = int_to_ptr.vmem [resolvable:$true] %s28_s27 }
  0x15   :  { %p189_p9 = scmp.lt.u32.totalorder %s185_s30, %s310_s1 }
  0x17   :  { %p191_p10 = pnand %p189_p9, %p186_p8 }
  0x19   :  { %194 = shalt.err (!%p191_p10)
}
  0x1a   :  { %s195_s8 = scalar_lea.vmem %s29_s27, 256  ;;  %p200_p12 = scmp.lt.s32.totalorder %s29_s27, %s29_s27 }
  0x1b   :  { %p196_p11 = scmp.ne.s32.totalorder %s29_s27, %s195_s8  ;;  %p201_p13 = scmp.lt.s32.totalorder %s195_s8, %s195_s8 }
  0x1d   :  { %p202_p0 = por %p201_p13, %p200_p12 }
  0x1f   :  { %p203_p1 = pnand %p202_p0, %p196_p11 }
  0x21   :  { %206 = shalt.err (!%p203_p1)
}
  0x22   :  { %s239_s0 = smov 64   ;;  %s240_s9 = smov 4  }
  0x23   :  { %34 = dma.hbm_to_vmem [thread:$0]  %s310_s1, 256, %s29_s27, [#allocation6], %s239_s0, %s239_s0, %s240_s9  }
  0x24   :  { %229 = dma.done.wait [#allocation3], 256  }
  0x25   :  { %230 = vsyncadd [#allocation3], 4294967040 }
  0x26   :  { %231 = dma.done.wait [#allocation6], 256  }
  0x27   :  { %232 = vsyncadd [#allocation6], 4294967040  ;;  %v241_v0 = vmov 0.0   ;;  %vm242_vm0 = vmmov 0   ;;  %v161_v1 = vld [vmem:[#allocation5] sm:$0xff]   ;;  %v162_v2 = vld [vmem:[#allocation5 + $0x8] sm:$0xff]  }
  0x28   :  { %144 = vmatprep.subr.bf16.mxu0 %v241_v0  ;;  %148 = vmatprep.mubr.msk.bf16.mxu0 %vm242_vm0, %v241_v0  ;;  %v44_v3 = vld [vmem:[#allocation2] sm:$0xff]  ;;  %v45_v4 = vld [vmem:[#allocation2 + $0x8] sm:$0xff]  ;;  %vm70_vm1 = vcmask 261120   ;;  %s243_s13 = smov [#allocation7]  }
  0x29   :  { %145 = vmatpush3.bf16.msra.mxu0 %v161_v1  ;;  %v46_v5 = vpack.c.bf16 %v45_v4, %v44_v3  ;;  %v137_v6 = vld [vmem:[%s311_s2] ss:$0 sm:$0xff]  ;;  %s124_s14 = sshll.u32 %s243_s13, 4  ;;  %s125_s14 = int_to_ptr.vmem [resolvable:$true] %s124_s14 }
  0x2a   :  { %146 = vmatprep.subr.bf16.mxu0 %v241_v0  ;;  %s207_s15 = scalar_lea.vmem %s125_s14, 256  ;;  %p212_p3 = scmp.lt.s32.totalorder %s125_s14, %s125_s14 }
  0x2b   :  { %p208_p2 = scmp.ne.s32.totalorder %s125_s14, %s207_s15  ;;  %p213_p4 = scmp.lt.s32.totalorder %s207_s15, %s207_s15 }
  0x2d   :  { %147 = vmatpush3.bf16.msra.mxu0 %v162_v2  ;;  %p214_p5 = por %p213_p4, %p212_p3 }
  0x2f   :  { %p215_p6 = pnand %p214_p5, %p208_p2 }
  0x30   :  { %149 = vmatmul.mubr.msk.bf16.vlgmr.msra.gmra.mrb[0].mxu0 %vm70_vm1, %v46_v5 }
 0x103   :  { %v108_v7 = vpop.f32.mrb[0].mxu0 }
 0x104   :  { %v109_v8 = vadd.f32 %v137_v6, %v108_v7  ;;  %v150_v9 = vpop.f32.mrb[1].mxu0 }
 0x105   :  { %v111_v10 = vpop.f32.mrb[2].mxu0 }
 0x106   :  { %v115_v11 = vmax.f32 %v109_v8, 0.0  ;;  %v112_v12 = vadd.f32 %v137_v6, %v111_v10  ;;  %v151_v13 = vpop.f32.mrb[3].mxu0 }
 0x108   :  { %117 = vst [vmem:[#allocation7] sm:$0xff] %v115_v11  ;;  %v116_v14 = vmax.f32 %v112_v12, 0.0 }
 0x10a   :  { %118 = vst [vmem:[#allocation7 + $0x8] sm:$0xff] %v116_v14 }
 0x10b   :  { %218 = shalt.err (!%p215_p6)
}
 0x10c   :  { %s219_s17 = scalar_lea.hbm %s312_s3, 256 }
 0x10d   :  { %p220_p7 = scmp.ne.s32.totalorder %s312_s3, %s219_s17  ;;  %p223_p8 = scmp.lt.u32.totalorder %s219_s17, %s312_s3 }
 0x10f   :  { %p225_p9 = pnand %p223_p8, %p220_p7 }
 0x111   :  { %228 = shalt.err (!%p225_p9)
}
 0x112   :  { %130 = dma.vmem_to_hbm [thread:$0]  %s125_s14, 256, %s312_s3, [#allocation4], %s236_s22, %s236_s22, %s237_s23  }
 0x113   :  { %233 = dma.done.wait [#allocation4], 256  }
 0x114   :  { %234 = vsyncadd [#allocation4], 4294967040 }
 0x115   :  { %134 = vsyncpa [#allocation3], 1 }
 0x116   :  { %135 = vsyncpa [#allocation6], 1 }
 0x117   :  { %136 = vsyncpa [#allocation4], 1 }

</bundles_post_ra>
